<compile_context>
chip_gen: v7x
topology: tpu7x:2x2x1
jax: 0.10.0
libtpu: 0.0.40
codegen_flags: <defaults>
</compile_context>

<pallas_src>
import functools

import jax
import jax.numpy as jnp
from jax.experimental import pallas as pl
from jax.experimental.pallas import tpu as pltpu


D_IN = 384
HIDDEN = 256
NUM_CLASSES = 6
C_PAD = 128  # lane-dense padded logits width (kernel-internal only)


def _mlp_kernel(x_ref, w1_ref, b1_ref, w2_ref, b2_ref, o_ref):
    # Hot path: two MXU matmuls + VPU relu + bias adds, fused in VMEM.
    x = x_ref[...]                                                # (tb, D_IN)
    h = jnp.dot(x, w1_ref[...], preferred_element_type=jnp.float32)
    h = jnp.maximum(h + b1_ref[...], 0.0)                         # ReLU, bias bcast (1, H)
    y = jnp.dot(h, w2_ref[...], preferred_element_type=jnp.float32)
    o_ref[...] = y + b2_ref[...]                                  # (tb, C_PAD) dense store


@functools.partial(jax.jit, static_argnames=("block_b",))
def _ekman_forward_padded(x, w1_t, b1, w2_t_pad, b2_pad, *, block_b):
    """x: (B, D_IN) f32; w1_t: (D_IN, HIDDEN); b1: (1, HIDDEN);
    w2_t_pad: (HIDDEN, C_PAD); b2_pad: (1, C_PAD). Returns (B, C_PAD) f32."""
    B = x.shape[0]
    grid = (pl.cdiv(B, block_b),)  # ragged last block handled by Pallas masking
    return pl.pallas_call(
        _mlp_kernel,
        out_shape=jax.ShapeDtypeStruct((B, C_PAD), jnp.float32),
        grid_spec=pltpu.PrefetchScalarGridSpec(
            num_scalar_prefetch=0,
            grid=grid,
            in_specs=[
                pl.BlockSpec((block_b, D_IN), lambda i: (i, 0)),     # x tile
                pl.BlockSpec((D_IN, HIDDEN), lambda i: (0, 0)),      # W1^T (resident)
                pl.BlockSpec((1, HIDDEN), lambda i: (0, 0)),         # b1
                pl.BlockSpec((HIDDEN, C_PAD), lambda i: (0, 0)),     # W2^T padded (resident)
                pl.BlockSpec((1, C_PAD), lambda i: (0, 0)),          # b2 padded
            ],
            out_specs=pl.BlockSpec((block_b, C_PAD), lambda i: (i, 0)),
        ),
        compiler_params=pltpu.CompilerParams(
            dimension_semantics=("parallel",),  # batch axis shards across TCs on v7x
        ),
    )(x, w1_t, b1, w2_t_pad, b2_pad)


def ekman_forward(x, w1_t, b1, w2_t, b2, *, block_b=512):
    """Forward pass.  x: (B, D_IN) f32; w1_t: (D_IN, HIDDEN); b1: (1, HIDDEN);
    w2_t: (HIDDEN, NUM_CLASSES); b2: (1, NUM_CLASSES). Returns (B, NUM_CLASSES)."""
    B = x.shape[0]
    # Don't use a 512-row tile for a tiny batch: shrink to the batch rounded up
    # to the f32 sublane multiple (8).  For large B the default 512 keeps VMEM
    # use ~2 MiB (fits all generations incl. v7x) and yields >=2 grid steps.
    eff_block_b = min(block_b, max(8, ((B + 7) // 8) * 8))
    # Zero-pad the second linear to a lane-dense 128-wide output.  Padded
    # columns are mathematically inert (zero weights + zero bias) and are
    # sliced off below, so downstream argmax/softmax never sees them.
    w2_t_pad = jnp.pad(w2_t, ((0, 0), (0, C_PAD - NUM_CLASSES)))
    b2_pad = jnp.pad(b2, ((0, 0), (0, C_PAD - NUM_CLASSES)))
    out = _ekman_forward_padded(x, w1_t, b1, w2_t_pad, b2_pad, block_b=eff_block_b)
    return out[:, :NUM_CLASSES]


def init_params(key):
    """Deterministic init mimicking nn.Linear defaults: U(-1/sqrt(fan_in), 1/sqrt(fan_in))."""
    k1, k2, k3, k4 = jax.random.split(key, 4)
    bound1 = 1.0 / jnp.sqrt(jnp.float32(D_IN))
    bound2 = 1.0 / jnp.sqrt(jnp.float32(HIDDEN))
    # Stored transposed relative to PyTorch's (out, in) convention.
    w1_t = jax.random.uniform(k1, (D_IN, HIDDEN), jnp.float32, -bound1, bound1)
    b1 = jax.random.uniform(k2, (1, HIDDEN), jnp.float32, -bound1, bound1)
    w2_t = jax.random.uniform(k3, (HIDDEN, NUM_CLASSES), jnp.float32, -bound2, bound2)
    b2 = jax.random.uniform(k4, (1, NUM_CLASSES), jnp.float32, -bound2, bound2)
    return w1_t, b1, w2_t, b2


if __name__ == "__main__":
    key = jax.random.PRNGKey(0)
    k_param, k_x1, k_x2 = jax.random.split(key, 3)

    w1_t, b1, w2_t, b2 = init_params(k_param)

    def ref_forward(x):
        return jnp.maximum(x @ w1_t + b1, 0.0) @ w2_t + b2

    # Small-batch check (single grid step, adaptive tile).
    B_small = 32
    x_small = jax.random.normal(k_x1, (B_small, D_IN), dtype=jnp.float32)
    y_small = jax.block_until_ready(ekman_forward(x_small, w1_t, b1, w2_t, b2))
    assert y_small.shape == (B_small, NUM_CLASSES)
    assert jnp.allclose(y_small, ref_forward(x_small), atol=1e-4, rtol=1e-4)

    # Larger-batch check (multi-step grid, 512-row tiles, parallel batch axis).
    B_big = 2048
    x_big = jax.random.normal(k_x2, (B_big, D_IN), dtype=jnp.float32)
    y_big = jax.block_until_ready(ekman_forward(x_big, w1_t, b1, w2_t, b2))
    assert y_big.shape == (B_big, NUM_CLASSES)
    assert jnp.allclose(y_big, ref_forward(x_big), atol=1e-4, rtol=1e-4)

    print("KERNEL_OK")
</pallas_src>

<mosaic_0001>
module attributes {stable_mosaic.version = 11 : i64} {
  func.func @_mlp_kernel(%arg0: i32, %arg1: memref<32x384xf32, #tpu.memory_space<vmem>>, %arg2: memref<384x256xf32, #tpu.memory_space<vmem>>, %arg3: memref<1x256xf32, #tpu.memory_space<vmem>>, %arg4: memref<256x128xf32, #tpu.memory_space<vmem>>, %arg5: memref<1x128xf32, #tpu.memory_space<vmem>>, %arg6: memref<32x128xf32, #tpu.memory_space<vmem>>) attributes {dimension_semantics = [#tpu.dimension_semantics<parallel>], iteration_bounds = array<i64: 1>, scalar_prefetch = 0 : i64, scratch_operands = 0 : i64, tpu.core_type = #tpu.core_type<tc>, window_params = [{transform_indices = @transform_0, window_bounds = array<i64: 32, 384>}, {pipeline_mode = #tpu.pipeline_mode<synchronous>, transform_indices = @transform_1, window_bounds = array<i64: 384, 256>}, {pipeline_mode = #tpu.pipeline_mode<synchronous>, transform_indices = @transform_2, window_bounds = array<i64: 1, 256>}, {pipeline_mode = #tpu.pipeline_mode<synchronous>, transform_indices = @transform_3, window_bounds = array<i64: 256, 128>}, {pipeline_mode = #tpu.pipeline_mode<synchronous>, transform_indices = @transform_4, window_bounds = array<i64: 1, 128>}, {transform_indices = @transform_5, window_bounds = array<i64: 32, 128>}]} {
    %c0 = arith.constant 0 : index
    %c0_0 = arith.constant 0 : index
    %0 = vector.load %arg1[%c0, %c0_0] : memref<32x384xf32, #tpu.memory_space<vmem>>, vector<32x384xf32>
    %c0_1 = arith.constant 0 : index
    %c0_2 = arith.constant 0 : index
    %1 = vector.load %arg2[%c0_1, %c0_2] : memref<384x256xf32, #tpu.memory_space<vmem>>, vector<384x256xf32>
    %cst = arith.constant dense<0.000000e+00> : vector<32x256xf32>
    %2 = tpu.matmul %0, %1, %cst {dimension_numbers = #tpu.dot_dimension_numbers<[1], [0], [0], [1], [0, 0, 1, 1], [], []>} : vector<32x384xf32>, vector<384x256xf32>, vector<32x256xf32> -> vector<32x256xf32>
    %c0_3 = arith.constant 0 : index
    %c0_4 = arith.constant 0 : index
    %3 = vector.load %arg3[%c0_3, %c0_4] : memref<1x256xf32, #tpu.memory_space<vmem>>, vector<1x256xf32>
    %4 = vector.broadcast %3 : vector<1x256xf32> to vector<32x256xf32>
    %5 = arith.addf %2, %4 : vector<32x256xf32>
    %cst_5 = arith.constant 0.000000e+00 : f32
    %6 = vector.broadcast %cst_5 : f32 to vector<32x256xf32>
    %7 = arith.maximumf %5, %6 : vector<32x256xf32>
    %c0_6 = arith.constant 0 : index
    %c0_7 = arith.constant 0 : index
    %8 = vector.load %arg4[%c0_6, %c0_7] : memref<256x128xf32, #tpu.memory_space<vmem>>, vector<256x128xf32>
    %cst_8 = arith.constant dense<0.000000e+00> : vector<32x128xf32>
    %9 = tpu.matmul %7, %8, %cst_8 {dimension_numbers = #tpu.dot_dimension_numbers<[1], [0], [0], [1], [0, 0, 1, 1], [], []>} : vector<32x256xf32>, vector<256x128xf32>, vector<32x128xf32> -> vector<32x128xf32>
    %c0_9 = arith.constant 0 : index
    %c0_10 = arith.constant 0 : index
    %10 = vector.load %arg5[%c0_9, %c0_10] : memref<1x128xf32, #tpu.memory_space<vmem>>, vector<1x128xf32>
    %11 = vector.broadcast %10 : vector<1x128xf32> to vector<32x128xf32>
    %12 = arith.addf %9, %11 : vector<32x128xf32>
    %c0_11 = arith.constant 0 : index
    %c0_12 = arith.constant 0 : index
    %13 = vector.load %arg6[%c0_11, %c0_12] : memref<32x128xf32, #tpu.memory_space<vmem>>, vector<32x128xf32>
    tpu.vector_store %arg6[%c0_11, %c0_12], %12 {strides = array<i32>} : memref<32x128xf32, #tpu.memory_space<vmem>>, vector<32x128xf32>,
    return
  }
  func.func @transform_0(%arg0: i32) -> (i32, i32) {
    %c0_i32 = arith.constant 0 : i32
    %c0_i32_0 = arith.constant 0 : i32
    return %arg0, %c0_i32 : i32, i32
  }
  func.func @transform_1(%arg0: i32) -> (i32, i32) {
    %c0_i32 = arith.constant 0 : i32
    %c0_i32_0 = arith.constant 0 : i32
    %c0_i32_1 = arith.constant 0 : i32
    return %c0_i32, %c0_i32_0 : i32, i32
  }
  func.func @transform_2(%arg0: i32) -> (i32, i32) {
    %c0_i32 = arith.constant 0 : i32
    %c0_i32_0 = arith.constant 0 : i32
    %c0_i32_1 = arith.constant 0 : i32
    return %c0_i32, %c0_i32_0 : i32, i32
  }
  func.func @transform_3(%arg0: i32) -> (i32, i32) {
    %c0_i32 = arith.constant 0 : i32
    %c0_i32_0 = arith.constant 0 : i32
    %c0_i32_1 = arith.constant 0 : i32
    return %c0_i32, %c0_i32_0 : i32, i32
  }
  func.func @transform_4(%arg0: i32) -> (i32, i32) {
    %c0_i32 = arith.constant 0 : i32
    %c0_i32_0 = arith.constant 0 : i32
    %c0_i32_1 = arith.constant 0 : i32
    return %c0_i32, %c0_i32_0 : i32, i32
  }
  func.func @transform_5(%arg0: i32) -> (i32, i32) {
    %c0_i32 = arith.constant 0 : i32
    %c0_i32_0 = arith.constant 0 : i32
    return %arg0, %c0_i32 : i32, i32
  }
}

</mosaic_0001>

<bundles_post_ra>
// kernel: _ekman_forward_padded.1
= control target key start
LH: loop header
LB: loop body
LE: loop exit
PB: predicated region body
PF: predicated region fallthrough
CT: control target
= control target key end

     0   :  { %10 = vsyncpa [#allocation3], 0  ;;  %s913_s0 = inlined_call_operand.hbm [shape: f32[32,384], index: 0, kind: input, shape index: {}]   ;;  %s914_s1 = inlined_call_operand.hbm [shape: f32[384,256], index: 1, kind: input, shape index: {}]   ;;  %s915_s2 = inlined_call_operand.vmem [shape: f32[1,256], index: 2, kind: input, shape index: {}]   ;;  %s916_s3 = inlined_call_operand.hbm [shape: f32[256,128], index: 3, kind: input, shape index: {}]   ;;  %s917_s4 = inlined_call_operand.vmem [shape: f32[1,128], index: 4, kind: input, shape index: {}]   ;;  %s918_s5 = inlined_call_operand.hbm [shape: f32[32,128], index: 5, kind: output, shape index: {}]  }
   0x1   :  { %11 = vsyncpa [#allocation6], 0 }
   0x2   :  { %12 = vsyncpa [#allocation4], 0  ;;  %s808_s18 = smov [#allocation5]   ;;  %s714_s22 = scalar_lea.hbm %s914_s1, 12288 }
   0x3   :  { %s30_s19 = sshll.u32 %s808_s18, 4  ;;  %p715_p0 = scmp.ne.s32.totalorder %s914_s1, %s714_s22  ;;  %s31_s19 = int_to_ptr.vmem [resolvable:$true] %s30_s19 }
   0x4   :  { %p718_p1 = scmp.lt.u32.totalorder %s714_s22, %s914_s1 }
   0x6   :  { %p720_p2 = pnand %p718_p1, %p715_p0 }
   0x8   :  { %723 = shalt.err (!%p720_p2)
}
   0x9   :  { %s724_s27 = scalar_lea.vmem %s31_s19, 12288  ;;  %p729_p4 = scmp.lt.s32.totalorder %s31_s19, %s31_s19 }
   0xa   :  { %p725_p3 = scmp.ne.s32.totalorder %s31_s19, %s724_s27  ;;  %p730_p5 = scmp.lt.s32.totalorder %s724_s27, %s724_s27 }
   0xc   :  { %p731_p6 = por %p730_p5, %p729_p4 }
   0xe   :  { %p732_p7 = pnand %p731_p6, %p725_p3 }
  0x10   :  { %735 = shalt.err (!%p732_p7)
}
  0x11   :  { %s809_s28 = smov 256   ;;  %s810_s29 = smov 16  }
  0x12   :  { %36 = dma.hbm_to_vmem [thread:$0]  %s914_s1, 12288, %s31_s19, [#allocation6], %s809_s28, %s809_s28, %s810_s29  }
  0x13   :  { %s811_s7 = smov [#allocation2]   ;;  %s736_s11 = scalar_lea.hbm %s913_s0, 1536 }
  0x14   :  { %s18_s8 = sshll.u32 %s811_s7, 4  ;;  %p737_p8 = scmp.ne.s32.totalorder %s913_s0, %s736_s11  ;;  %s19_s8 = int_to_ptr.vmem [resolvable:$true] %s18_s8 }
  0x15   :  { %p740_p9 = scmp.lt.u32.totalorder %s736_s11, %s913_s0 }
  0x17   :  { %p742_p10 = pnand %p740_p9, %p737_p8 }
  0x19   :  { %745 = shalt.err (!%p742_p10)
}
  0x1a   :  { %s746_s16 = scalar_lea.vmem %s19_s8, 1536  ;;  %p751_p12 = scmp.lt.s32.totalorder %s19_s8, %s19_s8 }
  0x1b   :  { %p747_p11 = scmp.ne.s32.totalorder %s19_s8, %s746_s16  ;;  %p752_p13 = scmp.lt.s32.totalorder %s746_s16, %s746_s16 }
  0x1d   :  { %p753_p0 = por %p752_p13, %p751_p12 }
  0x1f   :  { %p754_p1 = pnand %p753_p0, %p747_p11 }
  0x21   :  { %757 = shalt.err (!%p754_p1)
}
  0x22   :  { %s812_s1 = smov 384   ;;  %s813_s17 = smov 24  }
  0x23   :  { %24 = dma.hbm_to_vmem [thread:$0]  %s913_s0, 1536, %s19_s8, [#allocation3], %s812_s1, %s812_s1, %s813_s17  }
  0x24   :  { %s814_s20 = smov [#allocation7]   ;;  %s758_s24 = scalar_lea.hbm %s916_s3, 4096 }
  0x25   :  { %s44_s21 = sshll.u32 %s814_s20, 4  ;;  %p759_p2 = scmp.ne.s32.totalorder %s916_s3, %s758_s24  ;;  %s45_s21 = int_to_ptr.vmem [resolvable:$true] %s44_s21 }
  0x26   :  { %p762_p3 = scmp.lt.u32.totalorder %s758_s24, %s916_s3 }
  0x28   :  { %p764_p4 = pnand %p762_p3, %p759_p2 }
  0x2a   :  { %767 = shalt.err (!%p764_p4)
}
  0x2b   :  { %s768_s29 = scalar_lea.vmem %s45_s21, 4096  ;;  %p773_p6 = scmp.lt.s32.totalorder %s45_s21, %s45_s21 }
  0x2c   :  { %p769_p5 = scmp.ne.s32.totalorder %s45_s21, %s768_s29  ;;  %p774_p7 = scmp.lt.s32.totalorder %s768_s29, %s768_s29 }
  0x2e   :  { %p775_p8 = por %p774_p7, %p773_p6 }
  0x30   :  { %p776_p9 = pnand %p775_p8, %p769_p5 }
  0x32   :  { %779 = shalt.err (!%p776_p9)
}
  0x33   :  { %s815_s0 = smov 128   ;;  %s816_s30 = smov 8  }
  0x34   :  { %50 = dma.hbm_to_vmem [thread:$0]  %s916_s3, 4096, %s45_s21, [#allocation6], %s815_s0, %s815_s0, %s816_s30  }
  0x35   :  { %802 = dma.done.wait [#allocation3], 1536  }
  0x36   :  { %803 = vsyncadd [#allocation3], 4294965760 }
  0x37   :  { %804 = dma.done.wait [#allocation6], 16384  }
  0x38   :  { %805 = vsyncadd [#allocation6], 4294950912  ;;  %v817_v0 = vmov 0.0   ;;  %v75_v1 = vld [vmem:[#allocation5 + $0x8] sm:$0xff]  ;;  %v77_v2 = vld [vmem:[#allocation5 + $0x18] sm:$0xff]  ;;  %s818_s10 = smov [#allocation8]  }
  0x39   :  { %335 = vmatprep.mubr.f32.mxu1 %v817_v0  ;;  %v74_v3 = vld [vmem:[#allocation5] sm:$0xff]  ;;  %v559_v4 = vpack.c.bf16 %v77_v2, %v75_v1  ;;  %v76_v5 = vld [vmem:[#allocation5 + $0x10] sm:$0xff]  ;;  %v79_v6 = vld [vmem:[#allocation5 + $0x28] sm:$0xff]  ;;  %s501_s11 = sshll.u32 %s818_s10, 4  ;;  %s502_s11 = int_to_ptr.vmem [resolvable:$true] %s501_s11 }
  0x3a   :  { %v81_v7 = vld [vmem:[#allocation5 + $0x38] sm:$0xff]  ;;  %v561_v8 = vpack.c.bf16 %v76_v5, %v74_v3  ;;  %v78_v10 = vld [vmem:[#allocation5 + $0x20] sm:$0xff]  ;;  %v80_v11 = vld [vmem:[#allocation5 + $0x30] sm:$0xff]  ;;  %p785_p11 = scmp.lt.s32.totalorder %s502_s11, %s502_s11 }
  0x3b   :  { %v563_v9 = vpack.c.bf16 %v81_v7, %v79_v6  ;;  %v83_v12 = vld [vmem:[#allocation5 + $0x48] sm:$0xff]  ;;  %560 = vmatprep.subr.bf16.mxu0 %v559_v4  ;;  %v85_v13 = vld [vmem:[#allocation5 + $0x58] sm:$0xff]  ;;  %v565_v14 = vpack.c.bf16 %v80_v11, %v78_v10  ;;  %v82_v16 = vld [vmem:[#allocation5 + $0x40] sm:$0xff] }
  0x3c   :  { %562 = vmatpush1.bf16.msra.mxu0 %v561_v8  ;;  %v567_v15 = vpack.c.bf16 %v85_v13, %v83_v12  ;;  %v84_v17 = vld [vmem:[#allocation5 + $0x50] sm:$0xff]  ;;  %v87_v18 = vld [vmem:[#allocation5 + $0x68] sm:$0xff]  ;;  %v89_v19 = vld [vmem:[#allocation5 + $0x78] sm:$0xff] }
  0x3d   :  { %564 = vmatprep.subr.bf16.mxu0 %v563_v9  ;;  %v569_v20 = vpack.c.bf16 %v84_v17, %v82_v16  ;;  %v571_v21 = vpack.c.bf16 %v89_v19, %v87_v18  ;;  %v86_v22 = vld [vmem:[#allocation5 + $0x60] sm:$0xff]  ;;  %v88_v23 = vld [vmem:[#allocation5 + $0x70] sm:$0xff]  ;;  %v91_v24 = vld [vmem:[#allocation5 + $0x88] sm:$0xff] }
  0x3e   :  { %v93_v25 = vld [vmem:[#allocation5 + $0x98] sm:$0xff]  ;;  %v573_v26 = vpack.c.bf16 %v88_v23, %v86_v22  ;;  %v139_v27 = vld [vmem:[#allocation5 + $0x208] sm:$0xff]  ;;  %v138_v29 = vld [vmem:[#allocation5 + $0x200] sm:$0xff] }
  0x3f   :  { %v141_v28 = vld [vmem:[#allocation5 + $0x218] sm:$0xff]  ;;  %v575_v30 = vpack.c.bf16 %v93_v25, %v91_v24  ;;  %v90_v31 = vld [vmem:[#allocation5 + $0x80] sm:$0xff]  ;;  %v92_v32 = vld [vmem:[#allocation5 + $0x90] sm:$0xff] }
  0x40   :  { %566 = vmatpush1.bf16.msra.mxu0 %v565_v14  ;;  %v623_v33 = vpack.c.bf16 %v141_v28, %v139_v27  ;;  %v140_v34 = vld [vmem:[#allocation5 + $0x210] sm:$0xff]  ;;  %v95_v35 = vld [vmem:[#allocation5 + $0xa8] sm:$0xff]  ;;  %v97_v36 = vld [vmem:[#allocation5 + $0xb8] sm:$0xff]  ;;  %v577_v42 = vpack.c.bf16 %v92_v32, %v90_v31 }
  0x41   :  { %568 = vmatprep.subr.bf16.mxu0 %v567_v15  ;;  %v625_v37 = vpack.c.bf16 %v140_v34, %v138_v29  ;;  %v143_v38 = vld [vmem:[#allocation5 + $0x228] sm:$0xff]  ;;  %v145_v39 = vld [vmem:[#allocation5 + $0x238] sm:$0xff]  ;;  %v142_v40 = vld [vmem:[#allocation5 + $0x220] sm:$0xff]  ;;  %v579_v47 = vpack.c.bf16 %v97_v36, %v95_v35 }
  0x42   :  { %624 = vmatprep.subr.bf16.mxu1 %v623_v33  ;;  %v144_v41 = vld [vmem:[#allocation5 + $0x230] sm:$0xff]  ;;  %v94_v43 = vld [vmem:[#allocation5 + $0xa0] sm:$0xff]  ;;  %v627_v45 = vpack.c.bf16 %v145_v39, %v143_v38  ;;  %v99_v48 = vld [vmem:[#allocation5 + $0xc8] sm:$0xff] }
  0x43   :  { %v96_v44 = vld [vmem:[#allocation5 + $0xb0] sm:$0xff]  ;;  %626 = vmatpush1.bf16.msra.mxu1 %v625_v37  ;;  %v629_v46 = vpack.c.bf16 %v144_v41, %v142_v40  ;;  %v147_v49 = vld [vmem:[#allocation5 + $0x248] sm:$0xff]  ;;  %v149_v50 = vld [vmem:[#allocation5 + $0x258] sm:$0xff] }
  0x44   :  { %570 = vmatpush1.bf16.msra.mxu0 %v569_v20  ;;  %v101_v51 = vld [vmem:[#allocation5 + $0xd8] sm:$0xff]  ;;  %628 = vmatprep.subr.bf16.mxu1 %v627_v45  ;;  %v631_v52 = vpack.c.bf16 %v149_v50, %v147_v49  ;;  %v146_v53 = vld [vmem:[#allocation5 + $0x240] sm:$0xff]  ;;  %v148_v54 = vld [vmem:[#allocation5 + $0x250] sm:$0xff]  ;;  %v581_v55 = vpack.c.bf16 %v96_v44, %v94_v43 }
  0x45   :  { %572 = vmatprep.subr.bf16.mxu0 %v571_v21  ;;  %v98_v56 = vld [vmem:[#allocation5 + $0xc0] sm:$0xff]  ;;  %v633_v57 = vpack.c.bf16 %v148_v54, %v146_v53  ;;  %v151_v58 = vld [vmem:[#allocation5 + $0x268] sm:$0xff]  ;;  %v153_v59 = vld [vmem:[#allocation5 + $0x278] sm:$0xff]  ;;  %v583_v60 = vpack.c.bf16 %v101_v51, %v99_v48 }
  0x46   :  { %v100_v61 = vld [vmem:[#allocation5 + $0xd0] sm:$0xff]  ;;  %v635_v62 = vpack.c.bf16 %v153_v59, %v151_v58  ;;  %v150_v63 = vld [vmem:[#allocation5 + $0x260] sm:$0xff]  ;;  %v103_v2 = vld [vmem:[#allocation5 + $0xe8] sm:$0xff] }
  0x47   :  { %630 = vmatpush1.bf16.msra.mxu1 %v629_v46  ;;  %v152_v1 = vld [vmem:[#allocation5 + $0x270] sm:$0xff]  ;;  %v105_v3 = vld [vmem:[#allocation5 + $0xf8] sm:$0xff]  ;;  %v155_v4 = vld [vmem:[#allocation5 + $0x288] sm:$0xff]  ;;  %v585_v6 = vpack.c.bf16 %v100_v61, %v98_v56 }
  0x48   :  { %574 = vmatpush1.bf16.msra.mxu0 %v573_v26  ;;  %632 = vmatprep.subr.bf16.mxu1 %v631_v52  ;;  %v157_v5 = vld [vmem:[#allocation5 + $0x298] sm:$0xff]  ;;  %v102_v7 = vld [vmem:[#allocation5 + $0xe0] sm:$0xff]  ;;  %v104_v8 = vld [vmem:[#allocation5 + $0xf0] sm:$0xff]  ;;  %v637_v9 = vpack.c.bf16 %v152_v1, %v150_v63  ;;  %v587_v10 = vpack.c.bf16 %v105_v3, %v103_v2 }
  0x49   :  { %576 = vmatprep.subr.bf16.mxu0 %v575_v30  ;;  %v107_v11 = vld [vmem:[#allocation5 + $0x108] sm:$0xff]  ;;  %v639_v12 = vpack.c.bf16 %v157_v5, %v155_v4  ;;  %v154_v13 = vld [vmem:[#allocation5 + $0x280] sm:$0xff]  ;;  %v156_v14 = vld [vmem:[#allocation5 + $0x290] sm:$0xff]  ;;  %v589_v18 = vpack.c.bf16 %v104_v8, %v102_v7 }
  0x4a   :  { %v109_v15 = vld [vmem:[#allocation5 + $0x118] sm:$0xff]  ;;  %v159_v16 = vld [vmem:[#allocation5 + $0x2a8] sm:$0xff]  ;;  %v106_v19 = vld [vmem:[#allocation5 + $0x100] sm:$0xff]  ;;  %v641_v21 = vpack.c.bf16 %v156_v14, %v154_v13 }
  0x4b   :  { %634 = vmatpush1.bf16.msra.mxu1 %v633_v57  ;;  %v161_v17 = vld [vmem:[#allocation5 + $0x2b8] sm:$0xff]  ;;  %v108_v20 = vld [vmem:[#allocation5 + $0x110] sm:$0xff]  ;;  %v591_v22 = vpack.c.bf16 %v109_v15, %v107_v11  ;;  %v111_v23 = vld [vmem:[#allocation5 + $0x128] sm:$0xff] }
  0x4c   :  { %578 = vmatpush1.bf16.msra.mxu0 %v577_v42  ;;  %636 = vmatprep.subr.bf16.mxu1 %v635_v62  ;;  %v643_v24 = vpack.c.bf16 %v161_v17, %v159_v16  ;;  %v158_v25 = vld [vmem:[#allocation5 + $0x2a0] sm:$0xff]  ;;  %v160_v26 = vld [vmem:[#allocation5 + $0x2b0] sm:$0xff]  ;;  %v113_v27 = vld [vmem:[#allocation5 + $0x138] sm:$0xff]  ;;  %v593_v30 = vpack.c.bf16 %v108_v20, %v106_v19 }
  0x4d   :  { %580 = vmatprep.subr.bf16.mxu0 %v579_v47  ;;  %v163_v28 = vld [vmem:[#allocation5 + $0x2c8] sm:$0xff]  ;;  %v165_v29 = vld [vmem:[#allocation5 + $0x2d8] sm:$0xff]  ;;  %v110_v31 = vld [vmem:[#allocation5 + $0x120] sm:$0xff]  ;;  %v645_v33 = vpack.c.bf16 %v160_v26, %v158_v25  ;;  %v595_v35 = vpack.c.bf16 %v113_v27, %v111_v23 }
  0x4e   :  { %v112_v32 = vld [vmem:[#allocation5 + $0x130] sm:$0xff]  ;;  %v63_v34 = vld [vmem:[#allocation2 + $0x8] sm:$0xff]  ;;  %v647_v37 = vpack.c.bf16 %v165_v29, %v163_v28  ;;  %v162_v38 = vld [vmem:[#allocation5 + $0x2c0] sm:$0xff] }
  0x4f   :  { %638 = vmatpush1.bf16.msra.mxu1 %v637_v9  ;;  %v115_v36 = vld [vmem:[#allocation5 + $0x148] sm:$0xff]  ;;  %v164_v39 = vld [vmem:[#allocation5 + $0x2d0] sm:$0xff]  ;;  %v117_v40 = vld [vmem:[#allocation5 + $0x158] sm:$0xff]  ;;  %246 = vmatprep.mubr.f32.mxu0 %v63_v34  ;;  %v597_v43 = vpack.c.bf16 %v112_v32, %v110_v31 }
  0x50   :  { %582 = vmatpush1.bf16.msra.mxu0 %v581_v55  ;;  %640 = vmatprep.subr.bf16.mxu1 %v639_v12  ;;  %v167_v41 = vld [vmem:[#allocation5 + $0x2e8] sm:$0xff]  ;;  %v169_v42 = vld [vmem:[#allocation5 + $0x2f8] sm:$0xff]  ;;  %v114_v44 = vld [vmem:[#allocation5 + $0x140] sm:$0xff]  ;;  %v649_v46 = vpack.c.bf16 %v164_v39, %v162_v38  ;;  %v599_v47 = vpack.c.bf16 %v117_v40, %v115_v36 }
  0x51   :  { %584 = vmatprep.subr.bf16.mxu0 %v583_v60  ;;  %v116_v45 = vld [vmem:[#allocation5 + $0x150] sm:$0xff]  ;;  %v119_v48 = vld [vmem:[#allocation5 + $0x168] sm:$0xff]  ;;  %v651_v49 = vpack.c.bf16 %v169_v42, %v167_v41  ;;  %v166_v50 = vld [vmem:[#allocation5 + $0x2e0] sm:$0xff] }
  0x52   :  { %v168_v51 = vld [vmem:[#allocation5 + $0x2f0] sm:$0xff]  ;;  %v121_v52 = vld [vmem:[#allocation5 + $0x178] sm:$0xff]  ;;  %v384_v53 = vld [vmem:[#allocation7 + $0x80] sm:$0xff]  ;;  %v601_v55 = vpack.c.bf16 %v116_v45, %v114_v44 }
  0x53   :  { %642 = vmatpush1.bf16.msra.mxu1 %v641_v21  ;;  %v385_v54 = vld [vmem:[#allocation7 + $0x88] sm:$0xff]  ;;  %v653_v56 = vpack.c.bf16 %v168_v51, %v166_v50  ;;  %v603_v57 = vpack.c.bf16 %v121_v52, %v119_v48  ;;  %v118_v58 = vld [vmem:[#allocation5 + $0x160] sm:$0xff]  ;;  %v120_v59 = vld [vmem:[#allocation5 + $0x170] sm:$0xff] }
  0x54   :  { %586 = vmatpush1.bf16.msra.mxu0 %v585_v6  ;;  %644 = vmatprep.subr.bf16.mxu1 %v643_v24  ;;  %v123_v60 = vld [vmem:[#allocation5 + $0x188] sm:$0xff]  ;;  %v655_v61 = vpack.c.bf16 %v385_v54, %v384_v53  ;;  %v125_v62 = vld [vmem:[#allocation5 + $0x198] sm:$0xff]  ;;  %v368_v63 = vld [vmem:[#allocation7] sm:$0xff]  ;;  %v605_v4 = vpack.c.bf16 %v120_v59, %v118_v58 }
  0x55   :  { %588 = vmatprep.subr.bf16.mxu0 %v587_v10  ;;  %v369_v1 = vld [vmem:[#allocation7 + $0x8] sm:$0xff]  ;;  %v386_v2 = vld [vmem:[#allocation7 + $0x90] sm:$0xff]  ;;  %v387_v3 = vld [vmem:[#allocation7 + $0x98] sm:$0xff]  ;;  %v607_v6 = vpack.c.bf16 %v125_v62, %v123_v60 }
  0x56   :  { %v64_v5 = vld [vmem:[#allocation2 + $0x10] sm:$0xff]  ;;  %v122_v7 = vld [vmem:[#allocation5 + $0x180] sm:$0xff]  ;;  %v127_v9 = vld [vmem:[#allocation5 + $0x1a8] sm:$0xff]  ;;  %v657_v10 = vpack.c.bf16 %v369_v1, %v368_v63  ;;  %v659_v12 = vpack.c.bf16 %v387_v3, %v386_v2 }
  0x57   :  { %646 = vmatpush1.bf16.msra.mxu1 %v645_v33  ;;  %v124_v8 = vld [vmem:[#allocation5 + $0x190] sm:$0xff]  ;;  %v129_v11 = vld [vmem:[#allocation5 + $0x1b8] sm:$0xff]  ;;  %v388_v15 = vld [vmem:[#allocation7 + $0xa0] sm:$0xff] }
  0x58   :  { %590 = vmatpush1.bf16.msra.mxu0 %v589_v18  ;;  %648 = vmatprep.subr.bf16.mxu1 %v647_v37  ;;  %v370_v13 = vld [vmem:[#allocation7 + $0x10] sm:$0xff]  ;;  %v371_v14 = vld [vmem:[#allocation7 + $0x18] sm:$0xff]  ;;  %v389_v16 = vld [vmem:[#allocation7 + $0xa8] sm:$0xff]  ;;  %v609_v17 = vpack.c.bf16 %v124_v8, %v122_v7  ;;  %v611_v19 = vpack.c.bf16 %v129_v11, %v127_v9 }
  0x59   :  { %592 = vmatprep.subr.bf16.mxu0 %v591_v22  ;;  %v67_v18 = vld [vmem:[#allocation2 + $0x28] sm:$0xff]  ;;  %v126_v20 = vld [vmem:[#allocation5 + $0x1a0] sm:$0xff]  ;;  %v128_v21 = vld [vmem:[#allocation5 + $0x1b0] sm:$0xff]  ;;  %v661_v23 = vpack.c.bf16 %v371_v14, %v370_v13  ;;  %v663_v25 = vpack.c.bf16 %v389_v16, %v388_v15 }
  0x5a   :  { %v131_v22 = vld [vmem:[#allocation5 + $0x1c8] sm:$0xff]  ;;  %v133_v24 = vld [vmem:[#allocation5 + $0x1d8] sm:$0xff]  ;;  %v372_v26 = vld [vmem:[#allocation7 + $0x20] sm:$0xff] }
  0x5b   :  { %650 = vmatpush1.bf16.msra.mxu1 %v649_v46  ;;  %v373_v27 = vld [vmem:[#allocation7 + $0x28] sm:$0xff]  ;;  %v390_v28 = vld [vmem:[#allocation7 + $0xb0] sm:$0xff]  ;;  %v391_v29 = vld [vmem:[#allocation7 + $0xb8] sm:$0xff]  ;;  %v615_v32 = vpack.c.bf16 %v133_v24, %v131_v22 }
  0x5c   :  { %594 = vmatpush1.bf16.msra.mxu0 %v593_v30  ;;  %652 = vmatprep.subr.bf16.mxu1 %v651_v49  ;;  %v613_v30 = vpack.c.bf16 %v128_v21, %v126_v20  ;;  %v70_v31 = vld [vmem:[#allocation2 + $0x40] sm:$0xff]  ;;  %v132_v34 = vld [vmem:[#allocation5 + $0x1d0] sm:$0xff]  ;;  %v665_v36 = vpack.c.bf16 %v373_v27, %v372_v26  ;;  %v137_v37 = vld [vmem:[#allocation5 + $0x1f8] sm:$0xff]  ;;  %v667_v38 = vpack.c.bf16 %v391_v29, %v390_v28 }
  0x5d   :  { %596 = vmatprep.subr.bf16.mxu0 %v595_v35  ;;  %v130_v33 = vld [vmem:[#allocation5 + $0x1c0] sm:$0xff]  ;;  %v135_v35 = vld [vmem:[#allocation5 + $0x1e8] sm:$0xff]  ;;  %v374_v39 = vld [vmem:[#allocation7 + $0x30] sm:$0xff] }
  0x5e   :  { %v375_v40 = vld [vmem:[#allocation7 + $0x38] sm:$0xff]  ;;  %v392_v41 = vld [vmem:[#allocation7 + $0xc0] sm:$0xff]  ;;  %v393_v42 = vld [vmem:[#allocation7 + $0xc8] sm:$0xff]  ;;  %v619_v45 = vpack.c.bf16 %v137_v37, %v135_v35 }
  0x5f   :  { %654 = vmatpush1.bf16.msra.mxu1 %v653_v56  ;;  %v73_v44 = vld [vmem:[#allocation2 + $0x58] sm:$0xff]  ;;  %v134_v46 = vld [vmem:[#allocation5 + $0x1e0] sm:$0xff]  ;;  %v669_v48 = vpack.c.bf16 %v375_v40, %v374_v39  ;;  %v671_v49 = vpack.c.bf16 %v393_v42, %v392_v41  ;;  %v377_v51 = vld [vmem:[#allocation7 + $0x48] sm:$0xff] }
  0x60   :  { %598 = vmatpush1.bf16.msra.mxu0 %v597_v43  ;;  %656 = vmatprep.subr.bf16.mxu1 %v655_v61  ;;  %v617_v43 = vpack.c.bf16 %v132_v34, %v130_v33  ;;  %v376_v50 = vld [vmem:[#allocation7 + $0x40] sm:$0xff]  ;;  %v394_v52 = vld [vmem:[#allocation7 + $0xd0] sm:$0xff]  ;;  %v395_v53 = vld [vmem:[#allocation7 + $0xd8] sm:$0xff] }
  0x61   :  { %600 = vmatprep.subr.bf16.mxu0 %v599_v47  ;;  %v136_v47 = vld [vmem:[#allocation5 + $0x1f0] sm:$0xff]  ;;  %v62_v58 = vld [vmem:[#allocation2] sm:$0xff]  ;;  %v65_v61 = vld [vmem:[#allocation2 + $0x18] sm:$0xff] }
  0x62   :  { %336 = vmatmul.mubr.f32.vlgmr.msra.gmra.mrb[0].mxu1 %v64_v5  ;;  %v621_v54 = vpack.c.bf16 %v136_v47, %v134_v46  ;;  %v378_v56 = vld [vmem:[#allocation7 + $0x50] sm:$0xff]  ;;  %v66_v59 = vld [vmem:[#allocation2 + $0x20] sm:$0xff]  ;;  %v69_v62 = vld [vmem:[#allocation2 + $0x38] sm:$0xff] }
  0x63   :  { %341 = vmatprep.mubr.f32.mxu1 %v817_v0  ;;  %658 = vmatpush3.bf16.msra.mxu1 %v657_v10  ;;  %v68_v63 = vld [vmem:[#allocation2 + $0x30] sm:$0xff]  ;;  %v71_v2 = vld [vmem:[#allocation2 + $0x48] sm:$0xff]  ;;  %v396_v3 = vld [vmem:[#allocation7 + $0xe0] sm:$0xff] }
  0x64   :  { %602 = vmatpush1.bf16.msra.mxu0 %v601_v55  ;;  %660 = vmatprep.subr.bf16.mxu1 %v659_v12  ;;  %v673_v55 = vpack.c.bf16 %v377_v51, %v376_v50  ;;  %v72_v1 = vld [vmem:[#allocation2 + $0x50] sm:$0xff]  ;;  %v381_v7 = vld [vmem:[#allocation7 + $0x68] sm:$0xff]  ;;  %v399_v10 = vld [vmem:[#allocation7 + $0xf8] sm:$0xff] }
  0x65   :  { %604 = vmatprep.subr.bf16.mxu0 %v603_v57  ;;  %v379_v57 = vld [vmem:[#allocation7 + $0x58] sm:$0xff]  ;;  %v398_v9 = vld [vmem:[#allocation7 + $0xf0] sm:$0xff]  ;;  %v170_v26 = vld [vmem:[%s915_s2] sm:$0x3] }
  0x66   :  { %342 = vmatmul.mubr.f32.gmra.mrb[2].mxu1 %v67_v18  ;;  %v677_v60 = vpack.c.bf16 %v379_v57, %v378_v56  ;;  %v683_v11 = vpack.c.bf16 %v399_v10, %v398_v9  ;;  %v382_v12 = vld [vmem:[#allocation7 + $0x70] sm:$0xff]  ;;  %v383_v13 = vld [vmem:[#allocation7 + $0x78] sm:$0xff]  ;;  %v172_v18 = vlaneseq }
  0x67   :  { %347 = vmatprep.mubr.f32.mxu1 %v817_v0  ;;  %662 = vmatpush3.bf16.msra.mxu1 %v661_v23  ;;  %v685_v14 = vpack.c.bf16 %v383_v13, %v382_v12 }
  0x68   :  { %606 = vmatpush1.bf16.msra.mxu0 %v605_v4  ;;  %664 = vmatprep.subr.bf16.mxu1 %v663_v25  ;;  %v397_v4 = vld [vmem:[#allocation7 + $0xe8] sm:$0xff]  ;;  %v173_v21 = vshrl.u32 %v172_v18, 7 }
  0x69   :  { %608 = vmatprep.subr.bf16.mxu0 %v607_v6  ;;  %v679_v5 = vpack.c.bf16 %v397_v4, %v396_v3  ;;  %v380_v6 = vld [vmem:[#allocation7 + $0x60] sm:$0xff] }
  0x6a   :  { %348 = vmatmul.mubr.f32.gmra.mrb[4].mxu1 %v70_v31  ;;  %v681_v8 = vpack.c.bf16 %v381_v7, %v380_v6  ;;  %v174_v24 = vsub.s32 0, %v173_v21  ;;  %v178_v27 = vsub.s32 1, %v173_v21 }
  0x6b   :  { %353 = vmatprep.mubr.f32.mxu1 %v817_v0  ;;  %666 = vmatpush3.bf16.msra.mxu1 %v665_v36  ;;  %v675_v0 = vpack.c.bf16 %v395_v53, %v394_v52 }
  0x6c   :  { %610 = vmatpush1.bf16.msra.mxu0 %v609_v17  ;;  %668 = vmatprep.subr.bf16.mxu1 %v667_v38  ;;  %v175_v28 = vrot.slane %v170_v26, %v174_v24  ;;  %v179_v29 = vrot.slane %v170_v26, %v178_v27 }
  0x6d   :  { %612 = vmatprep.subr.bf16.mxu0 %v611_v19 }
  0x6e   :  { %354 = vmatmul.mubr.f32.gmra.mrb[6].mxu1 %v73_v44 }
  0x6f   :  { %670 = vmatpush3.bf16.msra.mxu1 %v669_v48 }
  0x70   :  { %614 = vmatpush1.bf16.msra.mxu0 %v613_v30  ;;  %672 = vmatprep.subr.bf16.mxu1 %v671_v49 }
  0x71   :  { %616 = vmatprep.subr.bf16.mxu0 %v615_v32 }
  0x73   :  { %674 = vmatpush3.bf16.msra.mxu1 %v673_v55 }
  0x74   :  { %618 = vmatpush1.bf16.msra.mxu0 %v617_v43  ;;  %676 = vmatprep.subr.bf16.mxu1 %v675_v0 }
  0x75   :  { %620 = vmatprep.subr.bf16.mxu0 %v619_v45 }
  0x77   :  { %678 = vmatpush3.bf16.msra.mxu1 %v677_v60 }
  0x78   :  { %622 = vmatpush1.bf16.msra.mxu0 %v621_v54  ;;  %680 = vmatprep.subr.bf16.mxu1 %v679_v5 }
  0x7b   :  { %247 = vmatmul.mubr.f32.vlgmr.msra.gmra.mrb[0].mxu0 %v62_v58  ;;  %682 = vmatpush3.bf16.msra.mxu1 %v681_v8 }
  0x7c   :  { %252 = vmatprep.mubr.f32.mxu0 %v66_v59  ;;  %684 = vmatprep.subr.bf16.mxu1 %v683_v11 }
  0x7f   :  { %253 = vmatmul.mubr.f32.gmra.mrb[2].mxu0 %v65_v61  ;;  %686 = vmatpush3.bf16.msra.mxu1 %v685_v14 }
  0x80   :  { %258 = vmatprep.mubr.f32.mxu0 %v69_v62  ;;  %v514_v62 = vld [vmem:[%s917_s4] ss:$0 sm:$0xff]  ;;  %s780_s4 = scalar_lea.vmem %s502_s11, 512 }
  0x81   :  { %p781_p10 = scmp.ne.s32.totalorder %s502_s11, %s780_s4  ;;  %p786_p12 = scmp.lt.s32.totalorder %s780_s4, %s780_s4 }
  0x83   :  { %259 = vmatmul.mubr.f32.gmra.mrb[4].mxu0 %v68_v63  ;;  %p787_p13 = por %p786_p12, %p785_p11 }
  0x84   :  { %264 = vmatprep.mubr.f32.mxu0 %v72_v1 }
  0x85   :  { %p788_p0 = pnand %p787_p13, %p781_p10 }
  0x87   :  { %265 = vmatmul.mubr.f32.gmra.mrb[6].mxu0 %v71_v2 }
 0x135   :  { %v337_v15 = vpop.f32.mrb[0].mxu1 }
 0x136   :  { %v339_v16 = vpop.f32.mrb[1].mxu1 }
 0x139   :  { %v343_v17 = vpop.f32.mrb[2].mxu1 }
 0x13a   :  { %v345_v19 = vpop.f32.mrb[3].mxu1 }
 0x13d   :  { %v349_v20 = vpop.f32.mrb[4].mxu1 }
 0x13e   :  { %v351_v22 = vpop.f32.mrb[5].mxu1 }
 0x141   :  { %v355_v23 = vpop.f32.mrb[6].mxu1 }
 0x142   :  { %v357_v25 = vpop.f32.mrb[7].mxu1 }
 0x14e   :  { %v248_v30 = vpop.f32.mrb[0].mxu0 }
 0x14f   :  { %v249_v31 = vadd.f32 %v248_v30, %v175_v28  ;;  %v250_v32 = vpop.f32.mrb[1].mxu0 }
 0x150   :  { %v251_v33 = vadd.f32 %v250_v32, %v179_v29 }
 0x151   :  { %v338_v34 = vadd.f32 %v337_v15, %v249_v31 }
 0x152   :  { %v340_v35 = vadd.f32 %v339_v16, %v251_v33  ;;  %v254_v36 = vpop.f32.mrb[2].mxu0 }
 0x153   :  { %v255_v37 = vadd.f32 %v254_v36, %v175_v28  ;;  %v256_v38 = vpop.f32.mrb[3].mxu0  ;;  %v360_v41 = vmax.f32 %v338_v34, 0.0 }
 0x154   :  { %v361_v39 = vmax.f32 %v340_v35, 0.0  ;;  %v257_v40 = vadd.f32 %v256_v38, %v179_v29 }
 0x155   :  { %v344_v42 = vadd.f32 %v343_v17, %v255_v37 }
 0x156   :  { %v346_v43 = vadd.f32 %v345_v19, %v257_v40  ;;  %v260_v44 = vpop.f32.mrb[4].mxu0  ;;  %471 = vmatprep.mubr.f32.mxu1 %v361_v39 }
 0x157   :  { %v261_v45 = vadd.f32 %v260_v44, %v175_v28  ;;  %v262_v46 = vpop.f32.mrb[5].mxu0  ;;  %472 = vmatmul.mubr.f32.vlgmr.msra.gmra.mrb[8].mxu1 %v360_v41  ;;  %v362_v49 = vmax.f32 %v344_v42, 0.0 }
 0x158   :  { %v363_v47 = vmax.f32 %v346_v43, 0.0  ;;  %v263_v48 = vadd.f32 %v262_v46, %v179_v29 }
 0x159   :  { %v350_v50 = vadd.f32 %v349_v20, %v261_v45 }
 0x15a   :  { %v352_v51 = vadd.f32 %v351_v22, %v263_v48  ;;  %v266_v52 = vpop.f32.mrb[6].mxu0  ;;  %476 = vmatprep.mubr.f32.mxu1 %v363_v47 }
 0x15b   :  { %v267_v53 = vadd.f32 %v266_v52, %v175_v28  ;;  %v268_v54 = vpop.f32.mrb[7].mxu0  ;;  %477 = vmatmul.mubr.f32.gmra.mrb[10].mxu1 %v362_v49  ;;  %v364_v56 = vmax.f32 %v350_v50, 0.0 }
 0x15c   :  { %v365_v55 = vmax.f32 %v352_v51, 0.0  ;;  %v269_v0 = vadd.f32 %v268_v54, %v179_v29 }
 0x15d   :  { %v356_v57 = vadd.f32 %v355_v23, %v267_v53 }
 0x15e   :  { %v358_v58 = vadd.f32 %v357_v25, %v269_v0  ;;  %481 = vmatprep.mubr.f32.mxu1 %v365_v55 }
 0x15f   :  { %482 = vmatmul.mubr.f32.gmra.mrb[12].mxu1 %v364_v56  ;;  %v366_v60 = vmax.f32 %v356_v57, 0.0 }
 0x160   :  { %v367_v59 = vmax.f32 %v358_v58, 0.0 }
 0x162   :  { %486 = vmatprep.mubr.f32.mxu1 %v367_v59 }
 0x163   :  { %487 = vmatmul.mubr.f32.gmra.mrb[14].mxu1 %v366_v60 }
 0x22a   :  { %v547_v61 = vpop.f32.mrb[8].mxu1 }
 0x22b   :  { %v548_v63 = vpop.f32.mrb[9].mxu1 }
 0x22c   :  { %v549_v1 = vadd.f32 %v548_v63, %v547_v61 }
 0x22e   :  { %v474_v2 = vadd.f32 %v549_v1, %v514_v62  ;;  %v550_v3 = vpop.f32.mrb[10].mxu1 }
 0x22f   :  { %v551_v4 = vpop.f32.mrb[11].mxu1 }
 0x230   :  { %492 = vst [vmem:[#allocation8] sm:$0xff] %v474_v2  ;;  %v552_v5 = vadd.f32 %v551_v4, %v550_v3 }
 0x232   :  { %v479_v6 = vadd.f32 %v552_v5, %v514_v62  ;;  %v553_v7 = vpop.f32.mrb[12].mxu1 }
 0x233   :  { %v554_v8 = vpop.f32.mrb[13].mxu1 }
 0x234   :  { %493 = vst [vmem:[#allocation8 + $0x8] sm:$0xff] %v479_v6  ;;  %v555_v9 = vadd.f32 %v554_v8, %v553_v7 }
 0x236   :  { %v484_v10 = vadd.f32 %v555_v9, %v514_v62  ;;  %v556_v11 = vpop.f32.mrb[14].mxu1 }
 0x237   :  { %v557_v12 = vpop.f32.mrb[15].mxu1 }
 0x238   :  { %494 = vst [vmem:[#allocation8 + $0x10] sm:$0xff] %v484_v10  ;;  %v558_v13 = vadd.f32 %v557_v12, %v556_v11 }
 0x23a   :  { %v489_v14 = vadd.f32 %v558_v13, %v514_v62 }
 0x23c   :  { %495 = vst [vmem:[#allocation8 + $0x18] sm:$0xff] %v489_v14 }
 0x23d   :  { %791 = shalt.err (!%p788_p0)
}
 0x23e   :  { %s792_s14 = scalar_lea.hbm %s918_s5, 512 }
 0x23f   :  { %p793_p1 = scmp.ne.s32.totalorder %s918_s5, %s792_s14  ;;  %p796_p2 = scmp.lt.u32.totalorder %s792_s14, %s918_s5 }
 0x241   :  { %p798_p3 = pnand %p796_p2, %p793_p1 }
 0x243   :  { %801 = shalt.err (!%p798_p3)
}
 0x244   :  { %507 = dma.vmem_to_hbm [thread:$0]  %s502_s11, 512, %s918_s5, [#allocation4], %s815_s0, %s815_s0, %s816_s30  }
 0x245   :  { %806 = dma.done.wait [#allocation4], 512  }
 0x246   :  { %807 = vsyncadd [#allocation4], 4294966784 }
 0x247   :  { %511 = vsyncpa [#allocation3], 1 }
 0x248   :  { %512 = vsyncpa [#allocation6], 1 }
 0x249   :  { %513 = vsyncpa [#allocation4], 1 }

</bundles_post_ra>
